<compile_context>
chip_gen: v7x
topology: tpu7x:2x2x1
jax: 0.10.0
libtpu: 0.0.40
codegen_flags: <defaults>
</compile_context>

<pallas_src>
from functools import partial

import jax
import jax.numpy as jnp
from jax.experimental import pallas as pl
from jax.experimental.pallas import tpu as pltpu

TAG_PAD = 128        # lane-dense output width (>= num_tags), multiple of 128


def ner_kernel(x_ref, w1_ref, b1_ref, w2_ref, b2_ref, out_ref):
    """One grid step: (tile_n, E) pre-gathered embeddings -> Linear/ReLU -> Linear.

    x_ref  : (tile_n, E)       compute dtype, embedding rows for this tile
    w1_ref : (E, H)            compute dtype, VMEM-resident (hidden.weight.T)
    b1_ref : (1, H)            f32
    w2_ref : (H, TAG_PAD)      compute dtype, VMEM-resident (output.weight.T, padded)
    b2_ref : (1, TAG_PAD)      f32
    out_ref: (tile_n, TAG_PAD) compute dtype (lane-dense logits)
    """
    # hidden Linear + ReLU   (dropout p=0.3 is identity in eval mode)
    h = jnp.dot(x_ref[...], w1_ref[...],
                preferred_element_type=jnp.float32) + b1_ref[...]
    h = jnp.maximum(h, 0.0)

    # output Linear (lane-dense, tag dim padded to 128)
    out = jnp.dot(h.astype(w2_ref.dtype), w2_ref[...],
                  preferred_element_type=jnp.float32) + b2_ref[...]
    out_ref[...] = out.astype(out_ref.dtype)


@partial(jax.jit, static_argnames=("num_tags", "tile_n"))
def _forward(ids, emb, w1, b1, w2, b2, *, num_tags, tile_n):
    B, S = ids.shape
    N = B * S
    V, E = emb.shape
    H = w1.shape[1]
    cdtype = w1.dtype

    # Don't launch a tile far larger than the actual token count (keeps the
    # demo shapes cheap; for production N the default 1024 rows/step stands).
    tile_n = min(tile_n, max(8, -(-N // 8) * 8))
    n_tiles = pl.cdiv(N, tile_n)
    n_pad = n_tiles * tile_n

    # Embedding gather on the XLA side: one contiguous (tile_n, E) DMA per
    # grid step instead of tile_n tiny per-row HBM DMAs.  Pad rows use token 0
    # (padding_idx -> zero row); OOB ids are clamped (torch would raise).
    ids_flat = jnp.clip(ids.reshape(N).astype(jnp.int32), 0, V - 1)
    ids_flat = jnp.pad(ids_flat, (0, n_pad - N))
    x = jnp.take(emb, ids_flat, axis=0)                    # (n_pad, E) in cdtype

    itemsize = jnp.dtype(cdtype).itemsize
    flops = 2 * n_pad * (E * H + H * TAG_PAD)
    bytes_accessed = (n_pad * (E + TAG_PAD) * itemsize          # activations + logits
                      + (E * H + H * TAG_PAD) * itemsize        # weights
                      + (H + TAG_PAD) * 4)                      # biases (f32)

    out = pl.pallas_call(
        ner_kernel,
        out_shape=jax.ShapeDtypeStruct((n_pad, TAG_PAD), cdtype),
        grid_spec=pltpu.PrefetchScalarGridSpec(
            num_scalar_prefetch=0,
            grid=(n_tiles,),
            in_specs=[
                pl.BlockSpec((tile_n, E), lambda i: (i, 0)),     # streamed activations
                pl.BlockSpec((E, H), lambda i: (0, 0)),          # VMEM-resident weights
                pl.BlockSpec((1, H), lambda i: (0, 0)),
                pl.BlockSpec((H, TAG_PAD), lambda i: (0, 0)),
                pl.BlockSpec((1, TAG_PAD), lambda i: (0, 0)),
            ],
            out_specs=pl.BlockSpec((tile_n, TAG_PAD), lambda i: (i, 0)),
        ),
        compiler_params=pltpu.CompilerParams(
            dimension_semantics=("parallel",),
        ),
        cost_estimate=pl.CostEstimate(flops=flops, transcendentals=0,
                                      bytes_accessed=bytes_accessed),
    )(x, w1, b1, w2, b2)

    return out[:N, :num_tags].astype(jnp.float32).reshape(B, S, num_tags)


def baseline_ner_forward(ids, params, *, tile_n=1024):
    assert tile_n % 8 == 0
    return _forward(ids, params["emb"], params["w1"], params["b1"],
                    params["w2"], params["b2"],
                    num_tags=params["num_tags"], tile_n=tile_n)


def prepare_params(emb, w_hidden, b_hidden, w_out, b_out, *, dtype=jnp.bfloat16):
    """One-time conversion from torch layout to kernel layout.

    Transposes/pads weights, casts emb/w1/w2 to the compute dtype (default
    bf16; pass dtype=jnp.float32 for full-precision parity).  Biases stay f32
    (added after f32 MXU accumulation).
    """
    H, E = w_hidden.shape
    T = w_out.shape[0]
    assert T <= TAG_PAD
    w2_p = jnp.zeros((H, TAG_PAD), jnp.float32).at[:, :T].set(
        jnp.asarray(w_out, jnp.float32).T).astype(dtype)
    b2_p = jnp.zeros((1, TAG_PAD), jnp.float32).at[:, :T].set(
        jnp.asarray(b_out, jnp.float32))
    return dict(emb=jnp.asarray(emb, jnp.float32).astype(dtype),
                w1=jnp.asarray(w_hidden, jnp.float32).T.astype(dtype),   # (E, H)
                b1=jnp.asarray(b_hidden, jnp.float32).reshape(1, H),
                w2=w2_p, b2=b2_p, num_tags=T)


def init_params(key, vocab_size, embedding_dim, hidden_dim, num_tags):
    k_emb, k_w1, k_b1, k_w2, k_b2 = jax.random.split(key, 5)
    emb = jax.random.normal(k_emb, (vocab_size, embedding_dim), jnp.float32)
    emb = emb.at[0].set(0.0)  # padding_idx=0
    # torch Linear stores weight as (out_features, in_features)
    w_hidden = jax.random.normal(k_w1, (hidden_dim, embedding_dim), jnp.float32) * 0.1
    b_hidden = jax.random.normal(k_b1, (hidden_dim,), jnp.float32) * 0.1
    w_out = jax.random.normal(k_w2, (num_tags, hidden_dim), jnp.float32) * 0.1
    b_out = jax.random.normal(k_b2, (num_tags,), jnp.float32) * 0.1
    return emb, w_hidden, b_hidden, w_out, b_out


def reference_forward(ids, emb, w_hidden, b_hidden, w_out, b_out):
    hp = jax.lax.Precision.HIGHEST
    x = emb[ids]                                                    # (B, S, E)
    h = jnp.maximum(jnp.dot(x, w_hidden.T, precision=hp) + b_hidden, 0.0)
    return jnp.dot(h, w_out.T, precision=hp) + b_out                # (B, S, T)


if __name__ == "__main__":
    configs = [
        # small demo shape, full f32, single tile
        dict(vocab_size=64, embedding_dim=32, hidden_dim=32, num_tags=9,
             B=2, S=8, dtype=jnp.float32, tile_n=1024, tol=1e-2),
        # larger: bf16 compute path + multi-tile grid
        dict(vocab_size=1000, embedding_dim=64, hidden_dim=128, num_tags=9,
             B=8, S=64, dtype=jnp.bfloat16, tile_n=128, tol=6e-2),
        # ragged E/H + tail-padding path (N=30 not a multiple of tile_n)
        dict(vocab_size=500, embedding_dim=100, hidden_dim=96, num_tags=9,
             B=3, S=10, dtype=jnp.float32, tile_n=16, tol=1e-2),
    ]
    key = jax.random.PRNGKey(0)
    for cfg in configs:
        key, k_params, k_ids = jax.random.split(key, 3)
        raw = init_params(k_params, cfg["vocab_size"], cfg["embedding_dim"],
                          cfg["hidden_dim"], cfg["num_tags"])
        params = prepare_params(*raw, dtype=cfg["dtype"])
        ids = jax.random.randint(k_ids, (cfg["B"], cfg["S"]), 0,
                                 cfg["vocab_size"], dtype=jnp.int32)

        logits = jax.block_until_ready(
            baseline_ner_forward(ids, params, tile_n=cfg["tile_n"]))

        # Reference with identically-quantized weights (fair for the bf16 path).
        emb, w_h, b_h, w_o, b_o = raw
        q = lambda a: a.astype(cfg["dtype"]).astype(jnp.float32)
        ref = reference_forward(ids, q(emb), q(w_h), b_h, q(w_o), b_o)

        assert logits.shape == (cfg["B"], cfg["S"], cfg["num_tags"])
        err = float(jnp.max(jnp.abs(logits - ref)))
        assert err < cfg["tol"], f"max abs err {err}"

    print("KERNEL_OK")
</pallas_src>

<mosaic_0001>
module attributes {stable_mosaic.version = 11 : i64} {
  func.func @ner_kernel(%arg0: i32, %arg1: memref<16x32xf32, #tpu.memory_space<vmem>>, %arg2: memref<32x32xf32, #tpu.memory_space<vmem>>, %arg3: memref<1x32xf32, #tpu.memory_space<vmem>>, %arg4: memref<32x128xf32, #tpu.memory_space<vmem>>, %arg5: memref<1x128xf32, #tpu.memory_space<vmem>>, %arg6: memref<16x128xf32, #tpu.memory_space<vmem>>) attributes {dimension_semantics = [#tpu.dimension_semantics<parallel>], iteration_bounds = array<i64: 1>, scalar_prefetch = 0 : i64, scratch_operands = 0 : i64, tpu.core_type = #tpu.core_type<tc>, window_params = [{transform_indices = @transform_0, window_bounds = array<i64: 16, 32>}, {pipeline_mode = #tpu.pipeline_mode<synchronous>, transform_indices = @transform_1, window_bounds = array<i64: 32, 32>}, {pipeline_mode = #tpu.pipeline_mode<synchronous>, transform_indices = @transform_2, window_bounds = array<i64: 1, 32>}, {pipeline_mode = #tpu.pipeline_mode<synchronous>, transform_indices = @transform_3, window_bounds = array<i64: 32, 128>}, {pipeline_mode = #tpu.pipeline_mode<synchronous>, transform_indices = @transform_4, window_bounds = array<i64: 1, 128>}, {transform_indices = @transform_5, window_bounds = array<i64: 16, 128>}]} {
    %c0 = arith.constant 0 : index
    %c0_0 = arith.constant 0 : index
    %0 = vector.load %arg1[%c0, %c0_0] : memref<16x32xf32, #tpu.memory_space<vmem>>, vector<16x32xf32>
    %c0_1 = arith.constant 0 : index
    %c0_2 = arith.constant 0 : index
    %1 = vector.load %arg2[%c0_1, %c0_2] : memref<32x32xf32, #tpu.memory_space<vmem>>, vector<32x32xf32>
    %cst = arith.constant dense<0.000000e+00> : vector<16x32xf32>
    %2 = tpu.matmul %0, %1, %cst {dimension_numbers = #tpu.dot_dimension_numbers<[1], [0], [0], [1], [0, 0, 1, 1], [], []>} : vector<16x32xf32>, vector<32x32xf32>, vector<16x32xf32> -> vector<16x32xf32>
    %c0_3 = arith.constant 0 : index
    %c0_4 = arith.constant 0 : index
    %3 = vector.load %arg3[%c0_3, %c0_4] : memref<1x32xf32, #tpu.memory_space<vmem>>, vector<1x32xf32>
    %4 = vector.broadcast %3 : vector<1x32xf32> to vector<16x32xf32>
    %5 = arith.addf %2, %4 : vector<16x32xf32>
    %cst_5 = arith.constant 0.000000e+00 : f32
    %6 = vector.broadcast %cst_5 : f32 to vector<16x32xf32>
    %7 = arith.maximumf %5, %6 : vector<16x32xf32>
    %c0_6 = arith.constant 0 : index
    %c0_7 = arith.constant 0 : index
    %8 = vector.load %arg4[%c0_6, %c0_7] : memref<32x128xf32, #tpu.memory_space<vmem>>, vector<32x128xf32>
    %cst_8 = arith.constant dense<0.000000e+00> : vector<16x128xf32>
    %9 = tpu.matmul %7, %8, %cst_8 {dimension_numbers = #tpu.dot_dimension_numbers<[1], [0], [0], [1], [0, 0, 1, 1], [], []>} : vector<16x32xf32>, vector<32x128xf32>, vector<16x128xf32> -> vector<16x128xf32>
    %c0_9 = arith.constant 0 : index
    %c0_10 = arith.constant 0 : index
    %10 = vector.load %arg5[%c0_9, %c0_10] : memref<1x128xf32, #tpu.memory_space<vmem>>, vector<1x128xf32>
    %11 = vector.broadcast %10 : vector<1x128xf32> to vector<16x128xf32>
    %12 = arith.addf %9, %11 : vector<16x128xf32>
    %c0_11 = arith.constant 0 : index
    %c0_12 = arith.constant 0 : index
    %13 = vector.load %arg6[%c0_11, %c0_12] : memref<16x128xf32, #tpu.memory_space<vmem>>, vector<16x128xf32>
    tpu.vector_store %arg6[%c0_11, %c0_12], %12 {strides = array<i32>} : memref<16x128xf32, #tpu.memory_space<vmem>>, vector<16x128xf32>,
    return
  }
  func.func @transform_0(%arg0: i32) -> (i32, i32) {
    %c0_i32 = arith.constant 0 : i32
    %c0_i32_0 = arith.constant 0 : i32
    return %arg0, %c0_i32 : i32, i32
  }
  func.func @transform_1(%arg0: i32) -> (i32, i32) {
    %c0_i32 = arith.constant 0 : i32
    %c0_i32_0 = arith.constant 0 : i32
    %c0_i32_1 = arith.constant 0 : i32
    return %c0_i32, %c0_i32_0 : i32, i32
  }
  func.func @transform_2(%arg0: i32) -> (i32, i32) {
    %c0_i32 = arith.constant 0 : i32
    %c0_i32_0 = arith.constant 0 : i32
    %c0_i32_1 = arith.constant 0 : i32
    return %c0_i32, %c0_i32_0 : i32, i32
  }
  func.func @transform_3(%arg0: i32) -> (i32, i32) {
    %c0_i32 = arith.constant 0 : i32
    %c0_i32_0 = arith.constant 0 : i32
    %c0_i32_1 = arith.constant 0 : i32
    return %c0_i32, %c0_i32_0 : i32, i32
  }
  func.func @transform_4(%arg0: i32) -> (i32, i32) {
    %c0_i32 = arith.constant 0 : i32
    %c0_i32_0 = arith.constant 0 : i32
    %c0_i32_1 = arith.constant 0 : i32
    return %c0_i32, %c0_i32_0 : i32, i32
  }
  func.func @transform_5(%arg0: i32) -> (i32, i32) {
    %c0_i32 = arith.constant 0 : i32
    %c0_i32_0 = arith.constant 0 : i32
    return %arg0, %c0_i32 : i32, i32
  }
}

</mosaic_0001>

<bundles_post_ra>
// kernel: _forward.1
= control target key start
LH: loop header
LB: loop body
LE: loop exit
PB: predicated region body
PF: predicated region fallthrough
CT: control target
= control target key end

     0   :  { %vm33_vm0 = vcmask 261120   ;;  %s347_s1 = inlined_call_operand.vmem [shape: f32[32,32], index: 1, kind: input, shape index: {}]   ;;  %s348_s0 = inlined_call_operand.vmem [shape: f32[16,32], index: 0, kind: input, shape index: {}]   ;;  %s349_s3 = inlined_call_operand.vmem [shape: f32[32,128], index: 3, kind: input, shape index: {}]   ;;  %s350_s2 = inlined_call_operand.vmem [shape: f32[1,32], index: 2, kind: input, shape index: {}]   ;;  %s351_s4 = inlined_call_operand.vmem [shape: f32[1,128], index: 4, kind: input, shape index: {}]   ;;  %s352_s5 = inlined_call_operand.vmem [shape: f32[16,128], index: 5, kind: output, shape index: {}]  }
   0x1   :  { %v22_v0 = vld [vmem:[%s347_s1] sm:$0xff]  ;;  %v23_v1 = vld [vmem:[%s347_s1 + $0x8] sm:$0xff]  ;;  %v24_v2 = vld [vmem:[%s347_s1 + $0x10] sm:$0xff] }
   0x2   :  { %v255_v3 = vpack.c.bf16 %v23_v1, %v22_v0  ;;  %v25_v4 = vld [vmem:[%s347_s1 + $0x18] sm:$0xff]  ;;  %v20_v5 = vld [vmem:[%s348_s0] sm:$0xff]  ;;  %v118_v8 = vld [vmem:[%s349_s3 + $0x8] sm:$0xff] }
   0x3   :  { %v259_v6 = vpack.c.bf16 %v25_v4, %v24_v2  ;;  %241 = vmatprep.mubr.msk.f32.mxu0 %vm33_vm0, %v20_v5  ;;  %v117_v7 = vld [vmem:[%s349_s3] sm:$0xff]  ;;  %v21_v10 = vld [vmem:[%s348_s0 + $0x8] sm:$0xff]  ;;  %v119_v11 = vld [vmem:[%s349_s3 + $0x10] sm:$0xff] }
   0x4   :  { %256 = vmatprep.subr.bf16.mxu0 %v255_v3  ;;  %v263_v9 = vpack.c.bf16 %v118_v8, %v117_v7  ;;  %v120_v12 = vld [vmem:[%s349_s3 + $0x18] sm:$0xff]  ;;  %v215_v14 = vld [vmem:[%s350_s2] ss:$0 sm:$0xff] }
   0x5   :  { %258 = vmatpush3.bf16.msra.mxu0 %v255_v3  ;;  %v267_v13 = vpack.c.bf16 %v120_v12, %v119_v11  ;;  %v218_v21 = vld [vmem:[%s351_s4] ss:$0 sm:$0xff] }
   0x6   :  { %260 = vmatprep.subr.bf16.mxu0 %v259_v6  ;;  %264 = vmatprep.subr.bf16.mxu1 %v263_v9 }
   0x7   :  { %266 = vmatpush3.bf16.msra.mxu1 %v263_v9 }
   0x8   :  { %268 = vmatprep.subr.bf16.mxu1 %v267_v13 }
   0x9   :  { %262 = vmatpush3.bf16.msra.mxu0 %v259_v6 }
   0xb   :  { %270 = vmatpush3.bf16.msra.mxu1 %v267_v13 }
   0xc   :  { %242 = vmatmul.mubr.msk.f32.vlgmr.msra.gmra.mrb[0].mxu0 %vm33_vm0, %v21_v10 }
  0xdf   :  { %v243_v15 = vpop.f32.mrb[0].mxu0 }
  0xe0   :  { %v112_v16 = vadd.f32 %v243_v15, %v215_v14  ;;  %v106_v17 = vpop.f32.mrb[1].mxu0 }
  0xe1   :  { %v107_v18 = vadd.f32 %v215_v14, %v106_v17 }
  0xe2   :  { %v116_v20 = vmax.f32 %v112_v16, 0.0 }
  0xe3   :  { %v115_v19 = vmax.f32 %v107_v18, 0.0 }
  0xe5   :  { %252 = vmatprep.mubr.msk.f32.mxu1 %vm33_vm0, %v115_v19 }
  0xe6   :  { %253 = vmatmul.mubr.msk.f32.vlgmr.msra.gmra.mrb[0].mxu1 %vm33_vm0, %v116_v20 }
 0x1b9   :  { %v254_v22 = vpop.f32.mrb[0].mxu1 }
 0x1ba   :  { %v206_v23 = vadd.f32 %v254_v22, %v218_v21  ;;  %v200_v24 = vpop.f32.mrb[1].mxu1 }
 0x1bb   :  { %v201_v25 = vadd.f32 %v218_v21, %v200_v24 }
 0x1bc   :  { %210 = vst [vmem:[%s352_s5 + $0x8] sm:$0xff] %v206_v23 }
 0x1bd   :  { %209 = vst [vmem:[%s352_s5] sm:$0xff] %v201_v25 }

</bundles_post_ra>
